<compile_context>
chip_gen: v7x
topology: tpu7x:2x2x1
jax: 0.10.0
libtpu: 0.0.40
codegen_flags: <defaults>
</compile_context>

<pallas_src>
import functools

import jax
import jax.numpy as jnp
from jax import lax
from jax.experimental import pallas as pl
from jax.experimental.pallas import tpu as pltpu

_VMEM_LIMIT = 48 * 1024 * 1024


def _round_up(x, m):
    return ((x + m - 1) // m) * m


# ----------------------------------------------------------------------------
# Stage 1: fused 4-head embedding (block-diag weight) + GCN weight W1
# ----------------------------------------------------------------------------
def _embed_kernel(uf_ref, wbd_ref, b_ref, w1_ref, h1_ref):
    y = jnp.dot(uf_ref[...], wbd_ref[...],
                preferred_element_type=jnp.float32) + b_ref[...]
    emb = jnp.maximum(y, 0.01 * y)          # LeakyReLU(0.01); Dropout(eval)=id
    h1 = jnp.dot(emb, w1_ref[...], preferred_element_type=jnp.float32)
    h1_ref[...] = h1.astype(h1_ref.dtype)


# ----------------------------------------------------------------------------
# Stages 2/3: out = (adj @ x) [@ W]   -- grid (row_tiles, k_reduction)
# ----------------------------------------------------------------------------
def _propagate_kernel(apply_w, adj_ref, x_ref, *rest):
    if apply_w:
        w_ref, o_ref, acc_ref = rest
    else:
        o_ref, acc_ref = rest
    k = pl.program_id(1)

    @pl.when(k == 0)
    def _():
        acc_ref[...] = jnp.zeros_like(acc_ref)

    acc_ref[...] += jnp.dot(adj_ref[...], x_ref[...],
                            preferred_element_type=jnp.float32)

    @pl.when(k == pl.num_programs(1) - 1)
    def _():
        if apply_w:
            o_ref[...] = jnp.dot(acc_ref[...], w_ref[...],
                                 preferred_element_type=jnp.float32
                                 ).astype(o_ref.dtype)
        else:
            o_ref[...] = acc_ref[...].astype(o_ref.dtype)


def _gcn_propagate(adj_bf, x_bf, weight, out_dtype, tm, tk):
    n_pad = adj_bf.shape[0]
    d_in = x_bf.shape[1]
    apply_w = weight is not None
    d_out = weight.shape[1] if apply_w else d_in

    in_specs = [
        pl.BlockSpec((tm, tk), lambda i, k: (i, k)),     # adj tile (bf16)
        pl.BlockSpec((tk, d_in), lambda i, k: (k, 0)),   # x rows for this k
    ]
    inputs = [adj_bf, x_bf]
    if apply_w:
        in_specs.append(pl.BlockSpec((d_in, d_out), lambda i, k: (0, 0)))
        inputs.append(weight)

    flops = 2 * n_pad * n_pad * d_in + (2 * n_pad * d_in * d_out if apply_w else 0)
    bytes_accessed = (n_pad * n_pad * adj_bf.dtype.itemsize
                      + n_pad * d_in * x_bf.dtype.itemsize
                      + n_pad * d_out * jnp.dtype(out_dtype).itemsize)

    return pl.pallas_call(
        functools.partial(_propagate_kernel, apply_w),
        out_shape=jax.ShapeDtypeStruct((n_pad, d_out), out_dtype),
        grid=(n_pad // tm, n_pad // tk),
        in_specs=in_specs,
        out_specs=pl.BlockSpec((tm, d_out), lambda i, k: (i, 0)),
        scratch_shapes=[pltpu.VMEM((tm, d_in), jnp.float32)],
        compiler_params=pltpu.CompilerParams(
            dimension_semantics=("parallel", "arbitrary"),
            vmem_limit_bytes=_VMEM_LIMIT),
        cost_estimate=pl.CostEstimate(flops=flops, transcendentals=0,
                                      bytes_accessed=bytes_accessed),
    )(*inputs)


# ----------------------------------------------------------------------------
# Stage 4: reconstructions + clusters_distance, (i, j)-tiled
# ----------------------------------------------------------------------------
def _gram_dist_kernel(gamma, zi_ref, zj_ref, sqi_ref, sqj_ref,
                      recon_ref, dist_ref):
    # z_i @ z_j^T without materializing a transpose: contract axis 1 of both.
    gram = lax.dot_general(zi_ref[...], zj_ref[...],
                           dimension_numbers=(((1,), (1,)), ((), ())),
                           preferred_element_type=jnp.float32)
    recon_ref[...] = gram
    d2 = jnp.maximum(sqi_ref[...] + sqj_ref[...] - 2.0 * gram, 0.0)
    dist_ref[...] = jnp.exp(-gamma * d2)


# ----------------------------------------------------------------------------
# Wrapper: full CDEncoderDecoder forward
# ----------------------------------------------------------------------------
def cd_encoder_decoder_forward(user_feature, adj, params, sizes, gamma):
    """CDEncoderDecoder forward via tiled Pallas kernels.

    user_feature: (N, num_prop + cat_prop + des + tweet) float32
    adj:          (N, N) dense normalized adjacency, float32
    params:       dict of weight matrices (in, out) and biases (out,)
    sizes:        (num_prop_size, cat_prop_size, des_size, tweet_size)
    gamma:        python float
    """
    f32, bf16 = jnp.float32, jnp.bfloat16
    num_prop_size, cat_prop_size, des_size, tweet_size = sizes
    n, f_total = user_feature.shape
    sub = params["w_num"].shape[1]
    emb_dim = 4 * sub
    hidden_dim = params["w1"].shape[1]
    out_dim = params["w2"].shape[1]

    # ---- host glue: fuse the 4 heads into block-diag weight + concat bias --
    s0 = num_prop_size
    s1 = s0 + cat_prop_size
    s2 = s1 + des_size
    w_bd = jnp.zeros((f_total, emb_dim), f32)
    w_bd = w_bd.at[:s0, 0 * sub:1 * sub].set(params["w_num"].astype(f32))
    w_bd = w_bd.at[s0:s1, 1 * sub:2 * sub].set(params["w_cat"].astype(f32))
    w_bd = w_bd.at[s1:s2, 2 * sub:3 * sub].set(params["w_des"].astype(f32))
    w_bd = w_bd.at[s2:, 3 * sub:4 * sub].set(params["w_tweet"].astype(f32))
    b_cat = jnp.concatenate(
        [params["b_num"], params["b_cat"], params["b_des"], params["b_tweet"]]
    ).reshape(1, emb_dim).astype(f32)

    # ---- tiling plan: pad N so every grid axis divides evenly --------------
    if n <= 512:
        n_pad = _round_up(n, 128)
        tm = tj = tk = n_pad               # single tile per axis at small N
    else:
        tm = tj = 256                      # row / column output tiles
        tk = 512                           # reduction tile over adj columns
        n_pad = _round_up(n, 512)
    pad = n_pad - n

    uf_p = jnp.pad(user_feature.astype(f32), ((0, pad), (0, 0)))
    adj_bf = jnp.pad(adj.astype(f32), ((0, pad), (0, pad))).astype(bf16)

    # ---- stage 1: h1 = leaky_relu(uf @ W_bd + b) @ W1  (bf16 for the GCN) --
    h1 = pl.pallas_call(
        _embed_kernel,
        out_shape=jax.ShapeDtypeStruct((n_pad, hidden_dim), bf16),
        grid=(n_pad // tm,),
        in_specs=[
            pl.BlockSpec((tm, f_total), lambda i: (i, 0)),
            pl.BlockSpec((f_total, emb_dim), lambda i: (0, 0)),
            pl.BlockSpec((1, emb_dim), lambda i: (0, 0)),
            pl.BlockSpec((emb_dim, hidden_dim), lambda i: (0, 0)),
        ],
        out_specs=pl.BlockSpec((tm, hidden_dim), lambda i: (i, 0)),
        compiler_params=pltpu.CompilerParams(
            dimension_semantics=("parallel",),
            vmem_limit_bytes=_VMEM_LIMIT),
        cost_estimate=pl.CostEstimate(
            flops=2 * n_pad * (f_total * emb_dim + emb_dim * hidden_dim),
            transcendentals=0,
            bytes_accessed=n_pad * f_total * 4 + n_pad * hidden_dim * 2),
    )(uf_p, w_bd, b_cat, params["w1"].astype(f32))

    # ---- stage 2: h2 = (adj @ h1) @ W2   (== z_hidden @ W2) ----------------
    h2 = _gcn_propagate(adj_bf, h1, params["w2"].astype(f32), bf16, tm, tk)

    # ---- stage 3: z_mean = adj @ h2 -----------------------------------------
    z_pad = _gcn_propagate(adj_bf, h2, None, f32, tm, tk)

    # ---- stage 4: gram + Gaussian pairwise-distance kernel -----------------
    # Row norms computed once, fed in both (N,1) and (1,N) layouts so the
    # kernel never transposes a vector.
    sq = jnp.sum(z_pad * z_pad, axis=1)
    sq_col = sq[:, None]
    sq_row = sq[None, :]

    recon_p, dist_p = pl.pallas_call(
        functools.partial(_gram_dist_kernel, float(gamma)),
        out_shape=(jax.ShapeDtypeStruct((n_pad, n_pad), f32),
                   jax.ShapeDtypeStruct((n_pad, n_pad), f32)),
        grid=(n_pad // tm, n_pad // tj),
        in_specs=[
            pl.BlockSpec((tm, out_dim), lambda i, j: (i, 0)),
            pl.BlockSpec((tj, out_dim), lambda i, j: (j, 0)),
            pl.BlockSpec((tm, 1), lambda i, j: (i, 0)),
            pl.BlockSpec((1, tj), lambda i, j: (0, j)),
        ],
        out_specs=(pl.BlockSpec((tm, tj), lambda i, j: (i, j)),
                   pl.BlockSpec((tm, tj), lambda i, j: (i, j))),
        compiler_params=pltpu.CompilerParams(
            dimension_semantics=("parallel", "parallel"),
            vmem_limit_bytes=_VMEM_LIMIT),
        cost_estimate=pl.CostEstimate(
            flops=2 * n_pad * n_pad * out_dim + 6 * n_pad * n_pad,
            transcendentals=n_pad * n_pad,
            bytes_accessed=2 * n_pad * n_pad * 4 + 2 * n_pad * out_dim * 4),
    )(z_pad, z_pad, sq_col, sq_row)

    recon = recon_p[:n, :n]
    dist = dist_p[:n, :n]
    z_mean = z_pad[:n, :]
    return recon, dist, z_mean


# ----------------------------------------------------------------------------
# Matched-precision pure-JAX reference (original per-head formulation)
# ----------------------------------------------------------------------------
def _reference_forward(user_feature, adj, params, sizes, gamma):
    f32, bf16 = jnp.float32, jnp.bfloat16
    num_prop_size, cat_prop_size, des_size, tweet_size = sizes
    s0 = num_prop_size
    s1 = s0 + cat_prop_size
    s2 = s1 + des_size

    def head(x, w, b):
        y = x @ w + b
        return jnp.where(y > 0, y, 0.01 * y)

    e_num = head(user_feature[:, :s0], params["w_num"], params["b_num"])
    e_cat = head(user_feature[:, s0:s1], params["w_cat"], params["b_cat"])
    e_des = head(user_feature[:, s1:s2], params["w_des"], params["b_des"])
    e_tw = head(user_feature[:, s2:], params["w_tweet"], params["b_tweet"])
    feat = jnp.concatenate([e_num, e_cat, e_des, e_tw], axis=1)

    # Same bf16 quantization points as the kernel (adj and GCN operands).
    adj_q = adj.astype(bf16).astype(f32)
    h1 = (feat @ params["w1"]).astype(bf16).astype(f32)
    z_hidden = adj_q @ h1
    h2 = (z_hidden @ params["w2"]).astype(bf16).astype(f32)
    z_mean = adj_q @ h2

    gram = z_mean @ z_mean.T
    sq = jnp.sum(z_mean * z_mean, axis=1, keepdims=True)
    d2 = jnp.maximum(sq + sq.T - 2.0 * gram, 0.0)
    return gram, jnp.exp(-gamma * d2), z_mean


# ----------------------------------------------------------------------------
# Deterministic parameter init + demo
# ----------------------------------------------------------------------------
def _init_params(key, sizes, embedding_dim, hidden_dim, output_dim):
    num_prop_size, cat_prop_size, des_size, tweet_size = sizes
    sub = embedding_dim // 4
    keys = jax.random.split(key, 10)

    def xavier(k, shape):
        fan_in, fan_out = shape
        bound = (6.0 / (fan_in + fan_out)) ** 0.5
        return jax.random.uniform(k, shape, jnp.float32, -bound, bound)

    return {
        "w_num": xavier(keys[0], (num_prop_size, sub)),
        "b_num": jnp.zeros((sub,), jnp.float32),
        "w_cat": xavier(keys[1], (cat_prop_size, sub)),
        "b_cat": jnp.zeros((sub,), jnp.float32),
        "w_des": xavier(keys[2], (des_size, sub)),
        "b_des": jnp.zeros((sub,), jnp.float32),
        "w_tweet": xavier(keys[3], (tweet_size, sub)),
        "b_tweet": jnp.zeros((sub,), jnp.float32),
        "w1": xavier(keys[4], (hidden_dim, hidden_dim)),
        "w2": xavier(keys[5], (hidden_dim, output_dim)),
    }


def _make_normalized_adj(key, n):
    a = (jax.random.uniform(key, (n, n)) > 0.7).astype(jnp.float32)
    a = jnp.maximum(a, a.T)
    a = a + jnp.eye(n, dtype=jnp.float32)
    a = jnp.minimum(a, 1.0)
    deg = jnp.sum(a, axis=1)
    d_inv_sqrt = 1.0 / jnp.sqrt(deg)
    return a * d_inv_sqrt[:, None] * d_inv_sqrt[None, :]


if __name__ == "__main__":
    N = 16                    # number of user nodes
    NUM_PROP, CAT_PROP, DES, TWEET = 4, 4, 8, 8
    EMBEDDING_DIM = 32        # == encoder_hidden_channel (hidden_dim)
    HIDDEN_DIM = 32
    OUTPUT_DIM = 16
    GAMMA = 0.5               # cd_config['gamma']
    sizes = (NUM_PROP, CAT_PROP, DES, TWEET)

    root = jax.random.PRNGKey(0)
    k_feat, k_adj, k_param = jax.random.split(root, 3)

    user_feature = jax.random.normal(
        k_feat, (N, NUM_PROP + CAT_PROP + DES + TWEET), jnp.float32)
    adj = _make_normalized_adj(k_adj, N)
    params = _init_params(k_param, sizes, EMBEDDING_DIM, HIDDEN_DIM, OUTPUT_DIM)

    recon, dist, z_mean = cd_encoder_decoder_forward(
        user_feature, adj, params, sizes, GAMMA)
    jax.block_until_ready((recon, dist, z_mean))

    r_ref, d_ref, z_ref = _reference_forward(
        user_feature, adj, params, sizes, GAMMA)
    assert bool(jnp.allclose(recon, r_ref, rtol=1e-2, atol=1e-2))
    assert bool(jnp.allclose(dist, d_ref, rtol=1e-2, atol=1e-2))
    assert bool(jnp.allclose(z_mean, z_ref, rtol=1e-2, atol=1e-2))

    print("KERNEL_OK")
</pallas_src>

<mosaic_0001>
module attributes {stable_mosaic.version = 11 : i64} {
  func.func @_embed_kernel(%arg0: i32, %arg1: memref<128x24xf32, #tpu.memory_space<vmem>>, %arg2: memref<24x32xf32, #tpu.memory_space<vmem>>, %arg3: memref<1x32xf32, #tpu.memory_space<vmem>>, %arg4: memref<32x32xf32, #tpu.memory_space<vmem>>, %arg5: memref<128x32xbf16, #tpu.memory_space<vmem>>) attributes {dimension_semantics = [#tpu.dimension_semantics<parallel>], iteration_bounds = array<i64: 1>, scalar_prefetch = 0 : i64, scratch_operands = 0 : i64, tpu.core_type = #tpu.core_type<tc>, window_params = [{transform_indices = @transform_0, window_bounds = array<i64: 128, 24>}, {pipeline_mode = #tpu.pipeline_mode<synchronous>, transform_indices = @transform_1, window_bounds = array<i64: 24, 32>}, {pipeline_mode = #tpu.pipeline_mode<synchronous>, transform_indices = @transform_2, window_bounds = array<i64: 1, 32>}, {pipeline_mode = #tpu.pipeline_mode<synchronous>, transform_indices = @transform_3, window_bounds = array<i64: 32, 32>}, {transform_indices = @transform_4, window_bounds = array<i64: 128, 32>}]} {
    %c0 = arith.constant 0 : index
    %c0_0 = arith.constant 0 : index
    %0 = vector.load %arg1[%c0, %c0_0] : memref<128x24xf32, #tpu.memory_space<vmem>>, vector<128x24xf32>
    %c0_1 = arith.constant 0 : index
    %c0_2 = arith.constant 0 : index
    %1 = vector.load %arg2[%c0_1, %c0_2] : memref<24x32xf32, #tpu.memory_space<vmem>>, vector<24x32xf32>
    %cst = arith.constant dense<0.000000e+00> : vector<128x32xf32>
    %2 = tpu.matmul %0, %1, %cst {dimension_numbers = #tpu.dot_dimension_numbers<[1], [0], [0], [1], [0, 0, 1, 1], [], []>} : vector<128x24xf32>, vector<24x32xf32>, vector<128x32xf32> -> vector<128x32xf32>
    %c0_3 = arith.constant 0 : index
    %c0_4 = arith.constant 0 : index
    %3 = vector.load %arg3[%c0_3, %c0_4] : memref<1x32xf32, #tpu.memory_space<vmem>>, vector<1x32xf32>
    %4 = vector.broadcast %3 : vector<1x32xf32> to vector<128x32xf32>
    %5 = arith.addf %2, %4 : vector<128x32xf32>
    %cst_5 = arith.constant 0.00999999977 : f32
    %6 = vector.broadcast %cst_5 : f32 to vector<128x32xf32>
    %7 = arith.mulf %6, %5 : vector<128x32xf32>
    %8 = arith.maximumf %5, %7 : vector<128x32xf32>
    %c0_6 = arith.constant 0 : index
    %c0_7 = arith.constant 0 : index
    %9 = vector.load %arg4[%c0_6, %c0_7] : memref<32x32xf32, #tpu.memory_space<vmem>>, vector<32x32xf32>
    %cst_8 = arith.constant dense<0.000000e+00> : vector<128x32xf32>
    %10 = tpu.matmul %8, %9, %cst_8 {dimension_numbers = #tpu.dot_dimension_numbers<[1], [0], [0], [1], [0, 0, 1, 1], [], []>} : vector<128x32xf32>, vector<32x32xf32>, vector<128x32xf32> -> vector<128x32xf32>
    %11 = arith.truncf %10 : vector<128x32xf32> to vector<128x32xbf16>
    %c0_9 = arith.constant 0 : index
    %c0_10 = arith.constant 0 : index
    %12 = vector.load %arg5[%c0_9, %c0_10] : memref<128x32xbf16, #tpu.memory_space<vmem>>, vector<128x32xbf16>
    tpu.vector_store %arg5[%c0_9, %c0_10], %11 {strides = array<i32>} : memref<128x32xbf16, #tpu.memory_space<vmem>>, vector<128x32xbf16>,
    return
  }
  func.func @transform_0(%arg0: i32) -> (i32, i32) {
    %c0_i32 = arith.constant 0 : i32
    %c0_i32_0 = arith.constant 0 : i32
    return %arg0, %c0_i32 : i32, i32
  }
  func.func @transform_1(%arg0: i32) -> (i32, i32) {
    %c0_i32 = arith.constant 0 : i32
    %c0_i32_0 = arith.constant 0 : i32
    %c0_i32_1 = arith.constant 0 : i32
    return %c0_i32, %c0_i32_0 : i32, i32
  }
  func.func @transform_2(%arg0: i32) -> (i32, i32) {
    %c0_i32 = arith.constant 0 : i32
    %c0_i32_0 = arith.constant 0 : i32
    %c0_i32_1 = arith.constant 0 : i32
    return %c0_i32, %c0_i32_0 : i32, i32
  }
  func.func @transform_3(%arg0: i32) -> (i32, i32) {
    %c0_i32 = arith.constant 0 : i32
    %c0_i32_0 = arith.constant 0 : i32
    %c0_i32_1 = arith.constant 0 : i32
    return %c0_i32, %c0_i32_0 : i32, i32
  }
  func.func @transform_4(%arg0: i32) -> (i32, i32) {
    %c0_i32 = arith.constant 0 : i32
    %c0_i32_0 = arith.constant 0 : i32
    return %arg0, %c0_i32 : i32, i32
  }
}

</mosaic_0001>

<bundles_post_ra>
// kernel: tpu_custom_call.1
= control target key start
LH: loop header
LB: loop body
LE: loop exit
PB: predicated region body
PF: predicated region fallthrough
CT: control target
= control target key end

     0   :  { %vm43_vm0 = vcmask 195584   ;;  %vm273_vm1 = vcmask 261120   ;;  %vm531_vm2 = vcmask 257024   ;;  %s941_s1 = inlined_call_operand.vmem [shape: f32[24,32], index: 1, kind: input, shape index: {}]   ;;  %s942_s0 = inlined_call_operand.vmem [shape: f32[128,24], index: 0, kind: input, shape index: {}]   ;;  %s943_s3 = inlined_call_operand.vmem [shape: f32[32,32], index: 3, kind: input, shape index: {}]   ;;  %s944_s2 = inlined_call_operand.vmem [shape: f32[1,32], index: 2, kind: input, shape index: {}]   ;;  %s945_s4 = inlined_call_operand.vmem [shape: bf16[128,32], index: 4, kind: output, shape index: {}]  }
   0x1   :  { %v33_v0 = vld [vmem:[%s941_s1] sm:$0xff]  ;;  %v34_v1 = vld [vmem:[%s941_s1 + $0x8] sm:$0xff]  ;;  %v35_v4 = vld [vmem:[%s941_s1 + $0x10] sm:$0xff] }
   0x2   :  { %v718_v2 = vpack.c.bf16 %v34_v1, %v33_v0  ;;  %v17_v3 = vld [vmem:[%s942_s0] sm:$0xff]  ;;  %v18_v5 = vld [vmem:[%s942_s0 + $0x8] sm:$0xff]  ;;  %v19_v6 = vld [vmem:[%s942_s0 + $0x10] sm:$0xff] }
   0x3   :  { %662 = vmatprep.mubr.msk.f32.mxu0 %vm43_vm0, %v17_v3  ;;  %v20_v7 = vld [vmem:[%s942_s0 + $0x18] sm:$0xff]  ;;  %v21_v8 = vld [vmem:[%s942_s0 + $0x20] sm:$0xff]  ;;  %v22_v9 = vld [vmem:[%s942_s0 + $0x28] sm:$0xff] }
   0x4   :  { %719 = vmatprep.subr.bf16.mxu0 %v718_v2  ;;  %v23_v10 = vld [vmem:[%s942_s0 + $0x30] sm:$0xff]  ;;  %v24_v11 = vld [vmem:[%s942_s0 + $0x38] sm:$0xff]  ;;  %v25_v12 = vld [vmem:[%s942_s0 + $0x40] sm:$0xff] }
   0x5   :  { %721 = vmatpush3.bf16.msra.mxu0 %v718_v2  ;;  %v26_v13 = vld [vmem:[%s942_s0 + $0x48] sm:$0xff]  ;;  %v27_v14 = vld [vmem:[%s942_s0 + $0x50] sm:$0xff]  ;;  %v28_v15 = vld [vmem:[%s942_s0 + $0x58] sm:$0xff] }
   0x6   :  { %660 = vmatprep.subr.mxu0 %v35_v4  ;;  %v29_v16 = vld [vmem:[%s942_s0 + $0x60] sm:$0xff]  ;;  %v30_v17 = vld [vmem:[%s942_s0 + $0x68] sm:$0xff]  ;;  %v31_v18 = vld [vmem:[%s942_s0 + $0x70] sm:$0xff] }
   0x7   :  { %v32_v19 = vld [vmem:[%s942_s0 + $0x78] sm:$0xff]  ;;  %v269_v20 = vld [vmem:[%s943_s3] sm:$0xff]  ;;  %v270_v21 = vld [vmem:[%s943_s3 + $0x8] sm:$0xff] }
   0x8   :  { %v722_v22 = vpack.c.bf16 %v270_v21, %v269_v20  ;;  %v271_v23 = vld [vmem:[%s943_s3 + $0x10] sm:$0xff]  ;;  %v272_v24 = vld [vmem:[%s943_s3 + $0x18] sm:$0xff]  ;;  %v843_v26 = vld [vmem:[%s944_s2] ss:$0 sm:$0xff] }
   0x9   :  { %661 = vmatpush3.msra.mxu0 %v35_v4  ;;  %v726_v25 = vpack.c.bf16 %v272_v24, %v271_v23 }
   0xa   :  { %663 = vmatmul.mubr.msk.f32.vlgmr.msra.gmra.mrb[0].mxu0 %vm43_vm0, %v18_v5  ;;  %723 = vmatprep.subr.bf16.mxu1 %v722_v22 }
   0xb   :  { %665 = vmatprep.mubr.msk.f32.mxu0 %vm43_vm0, %v19_v6  ;;  %725 = vmatpush3.bf16.msra.mxu1 %v722_v22 }
   0xc   :  { %727 = vmatprep.subr.bf16.mxu1 %v726_v25 }
   0xe   :  { %666 = vmatmul.mubr.msk.f32.gmra.mrb[2].mxu0 %vm43_vm0, %v20_v7 }
   0xf   :  { %668 = vmatprep.mubr.msk.f32.mxu0 %vm43_vm0, %v21_v8  ;;  %729 = vmatpush3.bf16.msra.mxu1 %v726_v25 }
  0x12   :  { %669 = vmatmul.mubr.msk.f32.gmra.mrb[4].mxu0 %vm43_vm0, %v22_v9 }
  0x13   :  { %671 = vmatprep.mubr.msk.f32.mxu0 %vm43_vm0, %v23_v10 }
  0x16   :  { %672 = vmatmul.mubr.msk.f32.gmra.mrb[6].mxu0 %vm43_vm0, %v24_v11 }
  0x17   :  { %674 = vmatprep.mubr.msk.f32.mxu0 %vm43_vm0, %v25_v12 }
  0x1a   :  { %675 = vmatmul.mubr.msk.f32.gmra.mrb[8].mxu0 %vm43_vm0, %v26_v13 }
  0x1b   :  { %677 = vmatprep.mubr.msk.f32.mxu0 %vm43_vm0, %v27_v14 }
  0x1e   :  { %678 = vmatmul.mubr.msk.f32.gmra.mrb[10].mxu0 %vm43_vm0, %v28_v15 }
  0x1f   :  { %680 = vmatprep.mubr.msk.f32.mxu0 %vm43_vm0, %v29_v16 }
  0x22   :  { %681 = vmatmul.mubr.msk.f32.gmra.mrb[12].mxu0 %vm43_vm0, %v30_v17 }
  0x23   :  { %683 = vmatprep.mubr.msk.f32.mxu0 %vm43_vm0, %v31_v18 }
  0x26   :  { %684 = vmatmul.mubr.msk.f32.gmra.mrb[14].mxu0 %vm43_vm0, %v32_v19 }
  0xdd   :  { %v664_v27 = vpop.f32.mrb[0].mxu0 }
  0xde   :  { %v164_v28 = vadd.f32 %v664_v27, %v843_v26  ;;  %v158_v29 = vpop.f32.mrb[1].mxu0 }
  0xdf   :  { %v159_v30 = vadd.f32 %v843_v26, %v158_v29 }
  0xe0   :  { %v238_v31 = vmul.f32 0.01, %v164_v28 }
  0xe1   :  { %v237_v32 = vmul.f32 0.01, %v159_v30  ;;  %v667_v33 = vpop.f32.mrb[2].mxu0 }
  0xe2   :  { %v174_v34 = vadd.f32 %v667_v33, %v843_v26  ;;  %v168_v35 = vpop.f32.mrb[3].mxu0  ;;  %v254_v38 = vmax.f32 %v164_v28, %v238_v31 }
  0xe3   :  { %v169_v36 = vadd.f32 %v843_v26, %v168_v35  ;;  %v253_v37 = vmax.f32 %v159_v30, %v237_v32 }
  0xe4   :  { %v240_v39 = vmul.f32 0.01, %v174_v34 }
  0xe5   :  { %v239_v40 = vmul.f32 0.01, %v169_v36  ;;  %v670_v41 = vpop.f32.mrb[4].mxu0  ;;  %694 = vmatprep.mubr.msk.f32.mxu1 %vm273_vm1, %v253_v37 }
  0xe6   :  { %v184_v42 = vadd.f32 %v670_v41, %v843_v26  ;;  %v178_v43 = vpop.f32.mrb[5].mxu0  ;;  %695 = vmatmul.mubr.msk.f32.vlgmr.msra.gmra.mrb[0].mxu1 %vm273_vm1, %v254_v38  ;;  %v256_v46 = vmax.f32 %v174_v34, %v240_v39 }
  0xe7   :  { %v255_v44 = vmax.f32 %v169_v36, %v239_v40  ;;  %v179_v45 = vadd.f32 %v843_v26, %v178_v43 }
  0xe8   :  { %v242_v47 = vmul.f32 0.01, %v184_v42 }
  0xe9   :  { %v241_v48 = vmul.f32 0.01, %v179_v45  ;;  %v673_v49 = vpop.f32.mrb[6].mxu0  ;;  %697 = vmatprep.mubr.msk.f32.mxu1 %vm273_vm1, %v255_v44 }
  0xea   :  { %v194_v50 = vadd.f32 %v673_v49, %v843_v26  ;;  %v188_v51 = vpop.f32.mrb[7].mxu0  ;;  %698 = vmatmul.mubr.msk.f32.gmra.mrb[2].mxu1 %vm273_vm1, %v256_v46  ;;  %v258_v54 = vmax.f32 %v184_v42, %v242_v47 }
  0xeb   :  { %v257_v52 = vmax.f32 %v179_v45, %v241_v48  ;;  %v189_v53 = vadd.f32 %v843_v26, %v188_v51 }
  0xec   :  { %v244_v55 = vmul.f32 0.01, %v194_v50 }
  0xed   :  { %v243_v56 = vmul.f32 0.01, %v189_v53  ;;  %v676_v57 = vpop.f32.mrb[8].mxu0  ;;  %700 = vmatprep.mubr.msk.f32.mxu1 %vm273_vm1, %v257_v52 }
  0xee   :  { %v204_v58 = vadd.f32 %v676_v57, %v843_v26  ;;  %v198_v59 = vpop.f32.mrb[9].mxu0  ;;  %701 = vmatmul.mubr.msk.f32.gmra.mrb[4].mxu1 %vm273_vm1, %v258_v54  ;;  %v260_v62 = vmax.f32 %v194_v50, %v244_v55 }
  0xef   :  { %v259_v60 = vmax.f32 %v189_v53, %v243_v56  ;;  %v199_v61 = vadd.f32 %v843_v26, %v198_v59 }
  0xf0   :  { %v246_v63 = vmul.f32 0.01, %v204_v58 }
  0xf1   :  { %v245_v0 = vmul.f32 0.01, %v199_v61  ;;  %v679_v1 = vpop.f32.mrb[10].mxu0  ;;  %703 = vmatprep.mubr.msk.f32.mxu1 %vm273_vm1, %v259_v60 }
  0xf2   :  { %v214_v2 = vadd.f32 %v679_v1, %v843_v26  ;;  %v208_v3 = vpop.f32.mrb[11].mxu0  ;;  %704 = vmatmul.mubr.msk.f32.gmra.mrb[6].mxu1 %vm273_vm1, %v260_v62  ;;  %v262_v6 = vmax.f32 %v204_v58, %v246_v63 }
  0xf3   :  { %v261_v4 = vmax.f32 %v199_v61, %v245_v0  ;;  %v209_v5 = vadd.f32 %v843_v26, %v208_v3 }
  0xf4   :  { %v248_v7 = vmul.f32 0.01, %v214_v2 }
  0xf5   :  { %v247_v8 = vmul.f32 0.01, %v209_v5  ;;  %v682_v9 = vpop.f32.mrb[12].mxu0  ;;  %706 = vmatprep.mubr.msk.f32.mxu1 %vm273_vm1, %v261_v4 }
  0xf6   :  { %v224_v10 = vadd.f32 %v682_v9, %v843_v26  ;;  %v218_v11 = vpop.f32.mrb[13].mxu0  ;;  %707 = vmatmul.mubr.msk.f32.gmra.mrb[8].mxu1 %vm273_vm1, %v262_v6  ;;  %v264_v14 = vmax.f32 %v214_v2, %v248_v7 }
  0xf7   :  { %v263_v12 = vmax.f32 %v209_v5, %v247_v8  ;;  %v219_v13 = vadd.f32 %v843_v26, %v218_v11 }
  0xf8   :  { %v250_v15 = vmul.f32 0.01, %v224_v10 }
  0xf9   :  { %v249_v16 = vmul.f32 0.01, %v219_v13  ;;  %v685_v17 = vpop.f32.mrb[14].mxu0  ;;  %709 = vmatprep.mubr.msk.f32.mxu1 %vm273_vm1, %v263_v12 }
  0xfa   :  { %v234_v18 = vadd.f32 %v685_v17, %v843_v26  ;;  %v228_v19 = vpop.f32.mrb[15].mxu0  ;;  %710 = vmatmul.mubr.msk.f32.gmra.mrb[10].mxu1 %vm273_vm1, %v264_v14  ;;  %v266_v22 = vmax.f32 %v224_v10, %v250_v15 }
  0xfb   :  { %v265_v20 = vmax.f32 %v219_v13, %v249_v16  ;;  %v229_v21 = vadd.f32 %v843_v26, %v228_v19 }
  0xfc   :  { %v252_v23 = vmul.f32 0.01, %v234_v18 }
  0xfd   :  { %v251_v24 = vmul.f32 0.01, %v229_v21  ;;  %712 = vmatprep.mubr.msk.f32.mxu1 %vm273_vm1, %v265_v20 }
  0xfe   :  { %713 = vmatmul.mubr.msk.f32.gmra.mrb[12].mxu1 %vm273_vm1, %v266_v22  ;;  %v268_v27 = vmax.f32 %v234_v18, %v252_v23 }
  0xff   :  { %v267_v25 = vmax.f32 %v229_v21, %v251_v24 }
 0x101   :  { %715 = vmatprep.mubr.msk.f32.mxu1 %vm273_vm1, %v267_v25 }
 0x102   :  { %716 = vmatmul.mubr.msk.f32.gmra.mrb[14].mxu1 %vm273_vm1, %v268_v27 }
 0x1b9   :  { %v696_v28 = vpop.f32.mrb[0].mxu1 }
 0x1ba   :  { %v602_v29 = vpack.c.bf16 %v696_v28, %v696_v28  ;;  %v388_v30 = vpop.f32.mrb[1].mxu1 }
 0x1bb   :  { %v601_v31 = vpack.c.bf16 %v388_v30, %v388_v30 }
 0x1bc   :  { %533 = vst.msk [vmem:[%s945_s4 + $0x4] sm:$0xf] %vm531_vm2, %v602_v29 }
 0x1bd   :  { %532 = vst.msk [vmem:[%s945_s4] sm:$0xf] %vm531_vm2, %v601_v31  ;;  %v699_v26 = vpop.f32.mrb[2].mxu1 }
 0x1be   :  { %v604_v32 = vpack.c.bf16 %v699_v26, %v699_v26  ;;  %v398_v33 = vpop.f32.mrb[3].mxu1 }
 0x1bf   :  { %v603_v34 = vpack.c.bf16 %v398_v33, %v398_v33 }
 0x1c0   :  { %535 = vst.msk [vmem:[%s945_s4 + $0xc] sm:$0xf] %vm531_vm2, %v604_v32 }
 0x1c1   :  { %534 = vst.msk [vmem:[%s945_s4 + $0x8] sm:$0xf] %vm531_vm2, %v603_v34  ;;  %v702_v35 = vpop.f32.mrb[4].mxu1 }
 0x1c2   :  { %v606_v36 = vpack.c.bf16 %v702_v35, %v702_v35  ;;  %v408_v37 = vpop.f32.mrb[5].mxu1 }
 0x1c3   :  { %v605_v38 = vpack.c.bf16 %v408_v37, %v408_v37 }
 0x1c4   :  { %537 = vst.msk [vmem:[%s945_s4 + $0x14] sm:$0xf] %vm531_vm2, %v606_v36 }
 0x1c5   :  { %536 = vst.msk [vmem:[%s945_s4 + $0x10] sm:$0xf] %vm531_vm2, %v605_v38  ;;  %v705_v39 = vpop.f32.mrb[6].mxu1 }
 0x1c6   :  { %v608_v40 = vpack.c.bf16 %v705_v39, %v705_v39  ;;  %v418_v41 = vpop.f32.mrb[7].mxu1 }
 0x1c7   :  { %v607_v42 = vpack.c.bf16 %v418_v41, %v418_v41 }
 0x1c8   :  { %539 = vst.msk [vmem:[%s945_s4 + $0x1c] sm:$0xf] %vm531_vm2, %v608_v40 }
 0x1c9   :  { %538 = vst.msk [vmem:[%s945_s4 + $0x18] sm:$0xf] %vm531_vm2, %v607_v42  ;;  %v708_v43 = vpop.f32.mrb[8].mxu1 }
 0x1ca   :  { %v610_v44 = vpack.c.bf16 %v708_v43, %v708_v43  ;;  %v428_v45 = vpop.f32.mrb[9].mxu1 }
 0x1cb   :  { %v609_v46 = vpack.c.bf16 %v428_v45, %v428_v45 }
 0x1cc   :  { %541 = vst.msk [vmem:[%s945_s4 + $0x24] sm:$0xf] %vm531_vm2, %v610_v44 }
 0x1cd   :  { %540 = vst.msk [vmem:[%s945_s4 + $0x20] sm:$0xf] %vm531_vm2, %v609_v46  ;;  %v711_v47 = vpop.f32.mrb[10].mxu1 }
 0x1ce   :  { %v612_v48 = vpack.c.bf16 %v711_v47, %v711_v47  ;;  %v438_v49 = vpop.f32.mrb[11].mxu1 }
 0x1cf   :  { %v611_v50 = vpack.c.bf16 %v438_v49, %v438_v49 }
 0x1d0   :  { %543 = vst.msk [vmem:[%s945_s4 + $0x2c] sm:$0xf] %vm531_vm2, %v612_v48 }
 0x1d1   :  { %542 = vst.msk [vmem:[%s945_s4 + $0x28] sm:$0xf] %vm531_vm2, %v611_v50  ;;  %v714_v51 = vpop.f32.mrb[12].mxu1 }
 0x1d2   :  { %v614_v52 = vpack.c.bf16 %v714_v51, %v714_v51  ;;  %v448_v53 = vpop.f32.mrb[13].mxu1 }
 0x1d3   :  { %v613_v54 = vpack.c.bf16 %v448_v53, %v448_v53 }
 0x1d4   :  { %545 = vst.msk [vmem:[%s945_s4 + $0x34] sm:$0xf] %vm531_vm2, %v614_v52 }
 0x1d5   :  { %544 = vst.msk [vmem:[%s945_s4 + $0x30] sm:$0xf] %vm531_vm2, %v613_v54  ;;  %v717_v55 = vpop.f32.mrb[14].mxu1 }
 0x1d6   :  { %v616_v56 = vpack.c.bf16 %v717_v55, %v717_v55  ;;  %v458_v57 = vpop.f32.mrb[15].mxu1 }
 0x1d7   :  { %v615_v58 = vpack.c.bf16 %v458_v57, %v458_v57 }
 0x1d8   :  { %547 = vst.msk [vmem:[%s945_s4 + $0x3c] sm:$0xf] %vm531_vm2, %v616_v56 }
 0x1d9   :  { %546 = vst.msk [vmem:[%s945_s4 + $0x38] sm:$0xf] %vm531_vm2, %v615_v58 }

</bundles_post_ra>
